<compile_context>
chip_gen: v7x
topology: tpu7x:2x2x1
jax: 0.10.0
libtpu: 0.0.40
codegen_flags: <defaults>
</compile_context>

<pallas_src>
import functools

import jax
import jax.numpy as jnp
from jax.experimental import pallas as pl
from jax.experimental.pallas import tpu as pltpu


def _round_up(n, m):
    return ((n + m - 1) // m) * m


def _pick_batch_tile(B, block_b=None):
    """Sublane-aligned batch tile + padded batch size."""
    SUB = 8
    if block_b is not None:
        tb = _round_up(min(block_b, _round_up(B, SUB)), SUB)
    elif B <= 16:
        tb = _round_up(B, SUB)                 # too small to split usefully
    elif B <= 1024:
        tb = _round_up(-(-B // 2), SUB)        # 2 tiles -> both v7x TCs get work
    else:
        tb = 512                               # fat tiles, ~HBM roofline, no spills
    Bp = _round_up(B, tb)
    return tb, Bp


def _chatbot_kernel(*refs, training):
    if training:
        x_ref, mask_ref, w1_ref, b1_ref, w2_ref, b2_ref, o_ref = refs
    else:
        x_ref, w1_ref, b1_ref, w2_ref, b2_ref, o_ref = refs

    # fc1: (tb, I) @ (I, Hp) on the MXU in bf16, f32 accumulate.
    x_bf = x_ref[...].astype(jnp.bfloat16)
    h = jnp.dot(x_bf, w1_ref[...], preferred_element_type=jnp.float32)
    h = h + b1_ref[...]                        # (1, Hp) broadcasts over the batch tile
    h = jnp.maximum(h, 0.0)                    # ReLU (f32, VPU)

    # Dropout: pre-scaled keep-mask (values are 0 or 1/(1-p)).  Identity when
    # training=False, matching model.eval().
    if training:
        h = h * mask_ref[...].astype(jnp.float32)

    # fc2: (tb, Hp) @ (Hp, O) in bf16, f32 accumulate.  O is the true output dim
    # (no lane padding) so the store is (tb, O) and writeback bytes stay minimal.
    logits = jnp.dot(h.astype(jnp.bfloat16), w2_ref[...],
                     preferred_element_type=jnp.float32)
    logits = logits + b2_ref[...]

    # Softmax over dim=1 (feature axis), exact normalization in f32.
    m = jnp.max(logits, axis=1, keepdims=True)
    e = jnp.exp(logits - m)
    o_ref[...] = (e / jnp.sum(e, axis=1, keepdims=True)).astype(o_ref.dtype)


def chatbot_forward(x, w1, b1, w2, b2, *, training=False, drop_p=0.5,
                    rng_key=None, block_b=None):
    """x: (B, I) f32; w1: (I, H); b1: (H,); w2: (H, O); b2: (O,). Returns (B, O) f32."""
    B, I = x.shape
    H = w1.shape[1]
    O = w2.shape[1]
    LANE = 128

    # Hidden dim padded to a lane-dense multiple of 128 (zeros -> ReLU -> zeros,
    # so padded hidden lanes contribute nothing to fc2).
    Hp = _round_up(H, LANE)

    tb, Bp = _pick_batch_tile(B, block_b)

    xp = x if Bp == B else jnp.pad(x, ((0, Bp - B), (0, 0)))
    w1p = jnp.pad(w1, ((0, 0), (0, Hp - H))).astype(jnp.bfloat16)
    b1p = jnp.pad(b1.astype(jnp.float32), (0, Hp - H)).reshape(1, Hp)
    w2p = jnp.pad(w2, ((0, Hp - H), (0, 0))).astype(jnp.bfloat16)
    b2p = b2.astype(jnp.float32).reshape(1, O)

    in_specs = [pl.BlockSpec((tb, I), lambda i: (i, 0))]            # x tile
    inputs = [xp]

    if training:
        if not (0.0 <= drop_p < 1.0):
            raise ValueError("drop_p must be in [0, 1) when training=True")
        if rng_key is None:
            rng_key = jax.random.PRNGKey(0)
        if drop_p > 0.0:
            keep = jax.random.bernoulli(rng_key, 1.0 - drop_p, (Bp, Hp))
            mask = (keep.astype(jnp.float32) * (1.0 / (1.0 - drop_p)))
        else:
            mask = jnp.ones((Bp, Hp), jnp.float32)
        mask = mask.astype(jnp.bfloat16)       # halves the mask DMA bytes
        in_specs.append(pl.BlockSpec((tb, Hp), lambda i: (i, 0)))   # mask tile
        inputs.append(mask)

    in_specs += [
        pl.BlockSpec((I, Hp), lambda i: (0, 0)),    # w1 (resident in VMEM)
        pl.BlockSpec((1, Hp), lambda i: (0, 0)),    # b1
        pl.BlockSpec((Hp, O), lambda i: (0, 0)),    # w2 (resident in VMEM)
        pl.BlockSpec((1, O), lambda i: (0, 0)),     # b2
    ]
    inputs += [w1p, b1p, w2p, b2p]

    kernel = functools.partial(_chatbot_kernel, training=training)

    out = pl.pallas_call(
        kernel,
        out_shape=jax.ShapeDtypeStruct((Bp, O), jnp.float32),
        grid=(Bp // tb,),
        in_specs=in_specs,
        out_specs=pl.BlockSpec((tb, O), lambda i: (i, 0)),
        compiler_params=pltpu.CompilerParams(
            dimension_semantics=("parallel",)),     # shard batch tiles across TCs
    )(*inputs)

    return out if Bp == B else out[:B]


def reference_forward(x, w1, b1, w2, b2):
    # Pure f32 reference of the eval path (dropout is identity in eval/inference).
    h = jnp.maximum(x @ w1 + b1, 0.0)
    logits = h @ w2 + b2
    return jax.nn.softmax(logits, axis=1)


if __name__ == "__main__":
    key = jax.random.PRNGKey(0)
    batch, input_size, hidden_size, output_size = 64, 32, 64, 16

    k_x, k_w1, k_b1, k_w2, k_b2, k_drop = jax.random.split(key, 6)
    x = jax.random.normal(k_x, (batch, input_size), dtype=jnp.float32)
    # Deterministic param init (uniform, roughly matching nn.Linear's scale).
    bound1 = 1.0 / (input_size ** 0.5)
    bound2 = 1.0 / (hidden_size ** 0.5)
    w1 = jax.random.uniform(k_w1, (input_size, hidden_size), jnp.float32, -bound1, bound1)
    b1 = jax.random.uniform(k_b1, (hidden_size,), jnp.float32, -bound1, bound1)
    w2 = jax.random.uniform(k_w2, (hidden_size, output_size), jnp.float32, -bound2, bound2)
    b2 = jax.random.uniform(k_b2, (output_size,), jnp.float32, -bound2, bound2)

    # Inference path (model.eval()): dropout is identity.  Default tiling -> grid=(2,).
    out = chatbot_forward(x, w1, b1, w2, b2, training=False)
    out = jax.block_until_ready(out)
    ref = reference_forward(x, w1, b1, w2, b2)
    assert out.shape == (batch, output_size)
    # bf16 MXU inputs -> compare with a modest tolerance.
    assert jnp.allclose(out, ref, atol=1e-2, rtol=1e-2), "mismatch vs reference"
    assert jnp.allclose(jnp.sum(out, axis=1), jnp.ones((batch,)), atol=1e-4)

    # Training path: dropout active via a wrapper-generated, pre-scaled keep-mask.
    out_tr = chatbot_forward(x, w1, b1, w2, b2, training=True, drop_p=0.5,
                             rng_key=k_drop)
    out_tr = jax.block_until_ready(out_tr)
    assert out_tr.shape == (batch, output_size)
    assert bool(jnp.all(jnp.isfinite(out_tr)))
    assert jnp.allclose(jnp.sum(out_tr, axis=1), jnp.ones((batch,)), atol=1e-4)

    print("KERNEL_OK")
</pallas_src>

<mosaic_0001>
module attributes {stable_mosaic.version = 11 : i64} {
  func.func @_chatbot_kernel(%arg0: i32, %arg1: memref<32x32xf32, #tpu.memory_space<vmem>>, %arg2: memref<32x128xbf16, #tpu.memory_space<vmem>>, %arg3: memref<1x128xf32, #tpu.memory_space<vmem>>, %arg4: memref<128x16xbf16, #tpu.memory_space<vmem>>, %arg5: memref<1x16xf32, #tpu.memory_space<vmem>>, %arg6: memref<32x16xf32, #tpu.memory_space<vmem>>) attributes {dimension_semantics = [#tpu.dimension_semantics<parallel>], iteration_bounds = array<i64: 2>, scalar_prefetch = 0 : i64, scratch_operands = 0 : i64, tpu.core_type = #tpu.core_type<tc>, window_params = [{transform_indices = @transform_0, window_bounds = array<i64: 32, 32>}, {pipeline_mode = #tpu.pipeline_mode<synchronous>, transform_indices = @transform_1, window_bounds = array<i64: 32, 128>}, {pipeline_mode = #tpu.pipeline_mode<synchronous>, transform_indices = @transform_2, window_bounds = array<i64: 1, 128>}, {pipeline_mode = #tpu.pipeline_mode<synchronous>, transform_indices = @transform_3, window_bounds = array<i64: 128, 16>}, {pipeline_mode = #tpu.pipeline_mode<synchronous>, transform_indices = @transform_4, window_bounds = array<i64: 1, 16>}, {transform_indices = @transform_5, window_bounds = array<i64: 32, 16>}]} {
    %c0 = arith.constant 0 : index
    %c0_0 = arith.constant 0 : index
    %0 = vector.load %arg1[%c0, %c0_0] : memref<32x32xf32, #tpu.memory_space<vmem>>, vector<32x32xf32>
    %1 = arith.truncf %0 : vector<32x32xf32> to vector<32x32xbf16>
    %c0_1 = arith.constant 0 : index
    %c0_2 = arith.constant 0 : index
    %2 = vector.load %arg2[%c0_1, %c0_2] : memref<32x128xbf16, #tpu.memory_space<vmem>>, vector<32x128xbf16>
    %cst = arith.constant dense<0.000000e+00> : vector<32x128xf32>
    %3 = tpu.matmul %1, %2, %cst {dimension_numbers = #tpu.dot_dimension_numbers<[1], [0], [0], [1], [0, 0, 1, 1], [], []>} : vector<32x32xbf16>, vector<32x128xbf16>, vector<32x128xf32> -> vector<32x128xf32>
    %c0_3 = arith.constant 0 : index
    %c0_4 = arith.constant 0 : index
    %4 = vector.load %arg3[%c0_3, %c0_4] : memref<1x128xf32, #tpu.memory_space<vmem>>, vector<1x128xf32>
    %5 = vector.broadcast %4 : vector<1x128xf32> to vector<32x128xf32>
    %6 = arith.addf %3, %5 : vector<32x128xf32>
    %cst_5 = arith.constant 0.000000e+00 : f32
    %7 = vector.broadcast %cst_5 : f32 to vector<32x128xf32>
    %8 = arith.maximumf %6, %7 : vector<32x128xf32>
    %9 = arith.truncf %8 : vector<32x128xf32> to vector<32x128xbf16>
    %c0_6 = arith.constant 0 : index
    %c0_7 = arith.constant 0 : index
    %10 = vector.load %arg4[%c0_6, %c0_7] : memref<128x16xbf16, #tpu.memory_space<vmem>>, vector<128x16xbf16>
    %cst_8 = arith.constant dense<0.000000e+00> : vector<32x16xf32>
    %11 = tpu.matmul %9, %10, %cst_8 {dimension_numbers = #tpu.dot_dimension_numbers<[1], [0], [0], [1], [0, 0, 1, 1], [], []>} : vector<32x128xbf16>, vector<128x16xbf16>, vector<32x16xf32> -> vector<32x16xf32>
    %c0_9 = arith.constant 0 : index
    %c0_10 = arith.constant 0 : index
    %12 = vector.load %arg5[%c0_9, %c0_10] : memref<1x16xf32, #tpu.memory_space<vmem>>, vector<1x16xf32>
    %13 = vector.broadcast %12 : vector<1x16xf32> to vector<32x16xf32>
    %14 = arith.addf %11, %13 : vector<32x16xf32>
    %cst_11 = arith.constant dense<0xFF800000> : vector<32xf32>
    %15 = vector.multi_reduction <maximumf>, %14, %cst_11 [1] : vector<32x16xf32> to vector<32xf32>
    %16 = vector.shape_cast %15 : vector<32xf32> to vector<32x1xf32>
    %17 = vector.broadcast %16 : vector<32x1xf32> to vector<32x16xf32>
    %18 = arith.subf %14, %17 : vector<32x16xf32>
    %19 = math.exp %18 : vector<32x16xf32>
    %cst_12 = arith.constant dense<0.000000e+00> : vector<32xf32>
    %20 = vector.multi_reduction <add>, %19, %cst_12 [1] : vector<32x16xf32> to vector<32xf32>
    %21 = vector.shape_cast %20 : vector<32xf32> to vector<32x1xf32>
    %22 = vector.broadcast %21 : vector<32x1xf32> to vector<32x16xf32>
    %23 = arith.divf %19, %22 : vector<32x16xf32>
    %c0_13 = arith.constant 0 : index
    %c0_14 = arith.constant 0 : index
    %24 = vector.load %arg6[%c0_13, %c0_14] : memref<32x16xf32, #tpu.memory_space<vmem>>, vector<32x16xf32>
    tpu.vector_store %arg6[%c0_13, %c0_14], %23 {strides = array<i32>} : memref<32x16xf32, #tpu.memory_space<vmem>>, vector<32x16xf32>,
    return
  }
  func.func @transform_0(%arg0: i32) -> (i32, i32) {
    %c0_i32 = arith.constant 0 : i32
    %c0_i32_0 = arith.constant 0 : i32
    return %arg0, %c0_i32 : i32, i32
  }
  func.func @transform_1(%arg0: i32) -> (i32, i32) {
    %c0_i32 = arith.constant 0 : i32
    %c0_i32_0 = arith.constant 0 : i32
    %c0_i32_1 = arith.constant 0 : i32
    return %c0_i32, %c0_i32_0 : i32, i32
  }
  func.func @transform_2(%arg0: i32) -> (i32, i32) {
    %c0_i32 = arith.constant 0 : i32
    %c0_i32_0 = arith.constant 0 : i32
    %c0_i32_1 = arith.constant 0 : i32
    return %c0_i32, %c0_i32_0 : i32, i32
  }
  func.func @transform_3(%arg0: i32) -> (i32, i32) {
    %c0_i32 = arith.constant 0 : i32
    %c0_i32_0 = arith.constant 0 : i32
    %c0_i32_1 = arith.constant 0 : i32
    return %c0_i32, %c0_i32_0 : i32, i32
  }
  func.func @transform_4(%arg0: i32) -> (i32, i32) {
    %c0_i32 = arith.constant 0 : i32
    %c0_i32_0 = arith.constant 0 : i32
    %c0_i32_1 = arith.constant 0 : i32
    return %c0_i32, %c0_i32_0 : i32, i32
  }
  func.func @transform_5(%arg0: i32) -> (i32, i32) {
    %c0_i32 = arith.constant 0 : i32
    %c0_i32_0 = arith.constant 0 : i32
    return %arg0, %c0_i32 : i32, i32
  }
}

</mosaic_0001>

<bundles_post_ra>
// kernel: tpu_custom_call.1
= control target key start
LH: loop header
LB: loop body
LE: loop exit
PB: predicated region body
PF: predicated region fallthrough
CT: control target
= control target key end

     0   :  { %s684_s18 = smov 0   ;;  %s756_s0 = inlined_call_operand.vmem [shape: f32[64,32], index: 0, kind: input, shape index: {}]   ;;  %s757_s1 = inlined_call_operand.vmem [shape: bf16[32,128], index: 1, kind: input, shape index: {}]   ;;  %s758_s2 = inlined_call_operand.vmem [shape: f32[1,128], index: 2, kind: input, shape index: {}]   ;;  %s759_s3 = inlined_call_operand.vmem [shape: bf16[128,16], index: 3, kind: input, shape index: {}]   ;;  %s760_s4 = inlined_call_operand.vmem [shape: f32[1,16], index: 4, kind: input, shape index: {}]   ;;  %s761_s5 = inlined_call_operand.vmem [shape: f32[64,16], index: 5, kind: output, shape index: {}]  }
   0x1 LB: > { %s545_s19 = sadd.s32 4294967295, %s652_s18   ;;  %p549_p0 = scmp.ge.s32.totalorder %s652_s18, 1  ;;  %s652_s18 = sphi %s684_s18, %s15_s18  }
   0x2   : > { %p188_p1 = scmp.lt.s32.totalorder %s652_s18, 3 }
   0x4   : > { %p189_p2 = pnand %p549_p0, %p188_p1 }
   0x5   : > { %v620_v0 = vld [vmem:[%s757_s1] sm:$0xff] (!%p189_p2)   ;;  %s550_s22 = sshll.u32 (!%p189_p2), %s545_s19, 2  ;;  %v621_v1 = vld [vmem:[%s757_s1 + $0x8] sm:$0xff] (!%p189_p2)   ;;  %v624_v4 = vld [vmem:[%s759_s3 + $0x10] sm:$0xff] (!%p189_p2)   ;;  %vm258_vm0 = vcmask (!%p189_p2), 261120   ;;  %vm440_vm1 = vcmask (!%p189_p2), 130048  }
   0x6   : > { %192 = sbr.rel (%p189_p2) target bundleno = 780 (0x30c), region = 40  ;;  %p217_p3 = scmp.lt.s32.totalorder (!%p189_p2), %s550_s22, 7  ;;  %584 = vmatprep.subr.bf16.mxu0 (!%p189_p2), %v620_v0  ;;  %v622_v2 = vld [vmem:[%s759_s3] sm:$0xff] (!%p189_p2)   ;;  %v623_v3 = vld [vmem:[%s759_s3 + $0x8] sm:$0xff] (!%p189_p2)   ;;  %v625_v11 = vld [vmem:[%s759_s3 + $0x18] sm:$0xff] (!%p189_p2)  }
   0x7   : > { %585 = vmatpush3.bf16.msra.mxu0 (!%p189_p2), %v620_v0  ;;  %592 = vmatprep.subr.bf16.mxu1 (!%p189_p2), %v622_v2  ;;  %v626_v12 = vld [vmem:[%s759_s3 + $0x20] sm:$0xff] (!%p189_p2)   ;;  %v627_v13 = vld [vmem:[%s759_s3 + $0x28] sm:$0xff] (!%p189_p2)   ;;  %v628_v14 = vld [vmem:[%s759_s3 + $0x30] sm:$0xff] (!%p189_p2)  }
   0x8   : > { %586 = vmatprep.subr.bf16.mxu0 (!%p189_p2), %v621_v1  ;;  %593 = vmatpush3.bf16.msra.mxu1 (!%p189_p2), %v622_v2  ;;  %v629_v15 = vld [vmem:[%s759_s3 + $0x38] sm:$0xff] (!%p189_p2)   ;;  %v554_v16 = vld [vmem:[%s758_s2] ss:$0 sm:$0xff] (!%p189_p2) }
   0x9   : > { %594 = vmatprep.subr.bf16.mxu1 (!%p189_p2), %v623_v3  ;;  %v559_v31 = vld [vmem:[%s760_s4] ss:$0 sm:$0xff] (!%p189_p2) }
   0xb   : > { %587 = vmatpush3.bf16.msra.mxu0 (!%p189_p2), %v621_v1 }
   0xc   : > { %595 = vmatpush3.bf16.msra.mxu1 (!%p189_p2), %v623_v3 }
   0xd   : > { %s763_s22 = smov (!%p217_p3, %s550_s22), 7  ;;  %596 = vmatprep.subr.bf16.mxu1 %v624_v4 }
   0xe   : > { %s551_s29 = sshll.u32 %s763_s22, 3 }
   0xf   : > { %s220_s7 = scalar_lea.vmem %s756_s0, %s551_s29  ;;  %s226_s28 = scalar_lea.vmem %s761_s5, %s551_s29 }
  0x10   : > { %v229_v5 = vld [vmem:[%s220_s7] sm:$0xff]  ;;  %v230_v6 = vld [vmem:[%s220_s7 + $0x8] sm:$0xff]  ;;  %v231_v7 = vld [vmem:[%s220_s7 + $0x10] sm:$0xff]  ;;  %597 = vmatpush3.bf16.msra.mxu1 %v624_v4 }
  0x11   : > { %v233_v8 = vpack.c.bf16 %v230_v6, %v229_v5  ;;  %v232_v9 = vld [vmem:[%s220_s7 + $0x18] sm:$0xff]  ;;  %598 = vmatprep.subr.bf16.mxu1 %v625_v11 }
  0x12   : > { %v234_v10 = vpack.c.bf16 %v232_v9, %v231_v7 }
  0x13   : > { %588 = vmatprep.mubr.msk.bf16.mxu0 %vm258_vm0, %v233_v8 }
  0x14   : > { %589 = vmatmul.mubr.msk.bf16.vlgmr.msra.gmra.mrb[0].mxu0 %vm258_vm0, %v234_v10  ;;  %599 = vmatpush3.bf16.msra.mxu1 %v625_v11 }
  0x15   : > { %600 = vmatprep.subr.bf16.mxu1 %v626_v12 }
  0x18   : > { %601 = vmatpush3.bf16.msra.mxu1 %v626_v12 }
  0x19   : > { %602 = vmatprep.subr.bf16.mxu1 %v627_v13 }
  0x1c   : > { %603 = vmatpush3.bf16.msra.mxu1 %v627_v13 }
  0x1d   : > { %604 = vmatprep.subr.bf16.mxu1 %v628_v14 }
  0x20   : > { %605 = vmatpush3.bf16.msra.mxu1 %v628_v14 }
  0x21   : > { %606 = vmatprep.subr.bf16.mxu1 %v629_v15 }
  0x24   : > { %607 = vmatpush3.bf16.msra.mxu1 %v629_v15 }
  0xe7   : > { %v590_v17 = vpop.f32.mrb[0].mxu0 }
  0xe8   : > { %v308_v18 = vadd.f32 %v590_v17, %v554_v16  ;;  %v299_v19 = vpop.f32.mrb[1].mxu0 }
  0xe9   : > { %v300_v20 = vadd.f32 %v554_v16, %v299_v19  ;;  %v591_v21 = vpop.f32.mrb[2].mxu0 }
  0xea   : > { %v311_v22 = vadd.f32 %v591_v21, %v554_v16  ;;  %v302_v23 = vpop.f32.mrb[3].mxu0  ;;  %v316_v25 = vmax.f32 %v308_v18, 0.0 }
  0xeb   : > { %v303_v24 = vadd.f32 %v554_v16, %v302_v23  ;;  %v314_v27 = vmax.f32 %v300_v20, 0.0 }
  0xec   : > { %v317_v26 = vmax.f32 %v311_v22, 0.0 }
  0xed   : > { %v315_v28 = vmax.f32 %v303_v24, 0.0 }
  0xee   : > { %v319_v29 = vpack.c.bf16 %v317_v26, %v316_v25 }
  0xef   : > { %v318_v30 = vpack.c.bf16 %v315_v28, %v314_v27 }
  0xf1   : > { %608 = vmatprep.mubr.bf16.mxu1 %v318_v30 }
  0xf2   : > { %609 = vmatmul.mubr.bf16.vlgmr.msra.gmra.mrb[0].mxu1 %v319_v29 }
 0x1c5   : > { %v610_v32 = vpop.f32.mrb[0].mxu1 }
 0x1c6   : > { %v434_v33 = vadd.f32 %v610_v32, %v559_v31  ;;  %v425_v34 = vpop.f32.mrb[1].mxu1 }
 0x1c7   : > { %v426_v35 = vadd.f32 %v559_v31, %v425_v34  ;;  %v611_v36 = vpop.f32.mrb[2].mxu1 }
 0x1c8   : > { %v437_v37 = vadd.f32 %v611_v36, %v559_v31  ;;  %v428_v38 = vpop.f32.mrb[3].mxu1  ;;  %v447_v39 = vsel %vm440_vm1, %v434_v33, -inf }
 0x1c9   : > { %v429_v40 = vadd.f32 %v559_v31, %v428_v38  ;;  %448 = vmax.xlane.f32.xlu1 %v447_v39  ;;  %v441_v41 = vsel %vm440_vm1, %v426_v35, -inf }
 0x1ca   : > { %442 = vmax.xlane.f32.xlu0 %v441_v41  ;;  %v450_v42 = vsel %vm440_vm1, %v437_v37, -inf }
 0x1cb   : > { %v444_v43 = vsel %vm440_vm1, %v429_v40, -inf }
 0x1cd   : > { %451 = vmax.xlane.f32.xlu1 %v450_v42 }
 0x1ce   : > { %445 = vmax.xlane.f32.xlu0 %v444_v43 }
 0x256   : > { %v449_v44 = vpop.xlane.xlu1 %448 }
 0x257   : > { %v455_v45 = vsub.f32 %v434_v33, %v449_v44  ;;  %v443_v46 = vpop.xlane.xlu0 %442 }
 0x258   : > { %v453_v47 = vsub.f32 %v426_v35, %v443_v46 }
 0x259   : > { %v461_v48 = vmul.f32 1.442695, %v455_v45 }
 0x25a   : > { %v457_v49 = vmul.f32 1.442695, %v453_v47  ;;  %v452_v50 = vpop.xlane.xlu1 %451 }
 0x25b   : > { %v456_v51 = vsub.f32 %v437_v37, %v452_v50  ;;  %v446_v52 = vpop.xlane.xlu0 %445 }
 0x25c   : > { %630 = vpow2.f32 %v457_v49  ;;  %v454_v53 = vsub.f32 %v429_v40, %v446_v52 }
 0x25d   : > { %632 = vpow2.f32 %v461_v48  ;;  %v463_v54 = vmul.f32 1.442695, %v456_v51 }
 0x25e   : > { %v459_v55 = vmul.f32 1.442695, %v454_v53 }
 0x260   : > { %634 = vpow2.f32 %v459_v55 }
 0x261   : > { %636 = vpow2.f32 %v463_v54 }
 0x266   : > { %v631_v56 = vpop.eup %630 }
 0x267   : > { %v465_v57 = vsel %vm440_vm1, %v631_v56, 0.0  ;;  %v633_v58 = vpop.eup %632 }
 0x268   : > { %466 = vadd.xlane.f32.xlu0 %v465_v57  ;;  %v471_v60 = vsel %vm440_vm1, %v633_v58, 0.0 }
 0x26a   : > { %v635_v59 = vpop.eup %634 }
 0x26b   : > { %v468_v61 = vsel %vm440_vm1, %v635_v59, 0.0  ;;  %v637_v62 = vpop.eup %636 }
 0x26c   : > { %472 = vadd.xlane.f32.xlu0 %v471_v60  ;;  %469 = vadd.xlane.f32.xlu1 %v468_v61  ;;  %v474_v63 = vsel %vm440_vm1, %v637_v62, 0.0 }
 0x270   : > { %475 = vadd.xlane.f32.xlu1 %v474_v63 }
 0x2f5   : > { %v467_v0 = vpop.xlane.xlu0 %466 }
 0x2f6   : > { %638 = vrcp.f32 %v467_v0 }
 0x2f9   : > { %v470_v1 = vpop.xlane.xlu1 %469  ;;  %v473_v2 = vpop.xlane.xlu0 %472 }
 0x2fa   : > { %640 = vrcp.f32 %v470_v1 }
 0x2fb   : > { %642 = vrcp.f32 %v473_v2 }
 0x2fd   : > { %v476_v3 = vpop.xlane.xlu1 %475 }
 0x2fe   : > { %644 = vrcp.f32 %v476_v3 }
 0x300   : > { %v639_v4 = vpop.eup %638 }
 0x301   : > { %v478_v5 = vmul.f32 %v639_v4, %v631_v56 }
 0x303   : > { %485 = vst.msk [vmem:[%s226_s28] sm:$0xff] %vm440_vm1, %v478_v5 }
 0x304   : > { %v641_v6 = vpop.eup %640 }
 0x305   : > { %v643_v7 = vpop.eup %642  ;;  %v480_v8 = vmul.f32 %v641_v6, %v635_v59 }
 0x306   : > { %v482_v9 = vmul.f32 %v643_v7, %v633_v58 }
 0x307   : > { %486 = vst.msk [vmem:[%s226_s28 + $0x8] sm:$0xff] %vm440_vm1, %v480_v8 }
 0x308   : > { %v645_v10 = vpop.eup %644  ;;  %487 = vst.msk [vmem:[%s226_s28 + $0x10] sm:$0xff] %vm440_vm1, %v482_v9 }
 0x309   : > { %v484_v11 = vmul.f32 %v645_v10, %v637_v62 }
 0x30b   : > { %488 = vst.msk [vmem:[%s226_s28 + $0x18] sm:$0xff] %vm440_vm1, %v484_v11 }
 0x30c PF: > { %s15_s18 = sadd.s32 1, %s652_s18  }
 0x30d   : > { %p12_p4 = scmp.ge.s32.totalorder %s15_s18, 4  }
 0x30f   :  { %14 = sbr.rel (!%p12_p4) target bundleno = 1 (0x1), region = 70 }

</bundles_post_ra>
